<compile_context>
chip_gen: v7x
topology: tpu7x:2x2x1
jax: 0.10.0
libtpu: 0.0.40
codegen_flags: <defaults>
</compile_context>

<pallas_src>
import functools
import math

import jax
import jax.numpy as jnp
from jax.experimental import pallas as pl
from jax.experimental.pallas import tpu as pltpu


# ------------------------------- helpers -------------------------------------

def _round_up(n, m):
    return ((n + m - 1) // m) * m


def _pad_to(a, shape):
    return jnp.pad(a, [(0, s - d) for d, s in zip(a.shape, shape)])


# ----------------------------- fused Pallas kernel ----------------------------

def _fused_causal_att_kernel(a_ref, x_ref, srow_ref, scol_ref,
                             w1r_ref, w1s_ref, b1_ref,
                             w2r_ref, w2s_ref, b2_ref,
                             wma_ref, wmb_ref, bm1_ref,
                             wm2_ref, bm2_ref,
                             h_ref, score_ref):
    f32 = jnp.float32
    bf16 = jnp.bfloat16

    a = a_ref[...]          # (Np, Np)   bf16 dense adjacency, A[dst, src] = w
    x = x_ref[...]          # (Np, Cinp) bf16 node features

    # conv1: relu( lin_rel(A @ x) + lin_root(x) + b )
    agg1 = jnp.dot(a, x, preferred_element_type=f32).astype(bf16)
    h1 = (jnp.dot(agg1, w1r_ref[...], preferred_element_type=f32)
          + jnp.dot(x, w1s_ref[...], preferred_element_type=f32)
          + b1_ref[...])
    h1 = jnp.maximum(h1, 0.0).astype(bf16)                      # (Np, Cp)

    # conv2 (no relu)
    agg2 = jnp.dot(a, h1, preferred_element_type=f32).astype(bf16)
    h2 = (jnp.dot(agg2, w2r_ref[...], preferred_element_type=f32)
          + jnp.dot(h1, w2s_ref[...], preferred_element_type=f32)
          + b2_ref[...])                                        # (Np, Cp) f32
    h_ref[...] = h2                                             # lane-dense store

    # edge MLP: relu( h[row] @ W1a + h[col] @ W1b + b1 ) @ W2 + b2
    # (row/col gather done on the MXU via one-hot selection matrices)
    h2b = h2.astype(bf16)
    h_row = jnp.dot(srow_ref[...], h2b, preferred_element_type=f32).astype(bf16)
    h_col = jnp.dot(scol_ref[...], h2b, preferred_element_type=f32).astype(bf16)
    hid = (jnp.dot(h_row, wma_ref[...], preferred_element_type=f32)
           + jnp.dot(h_col, wmb_ref[...], preferred_element_type=f32)
           + bm1_ref[...])
    hid = jnp.maximum(hid, 0.0).astype(bf16)
    score_ref[...] = (jnp.dot(hid, wm2_ref[...], preferred_element_type=f32)
                      + bm2_ref[...])                           # (Ep, 128) lane-dense


def fused_causal_att(A, Xp, Srow, Scol, pp):
    """Single pallas_call computing conv1 -> conv2 -> edge MLP. Returns (h_pad, score_pad)."""
    Np = A.shape[0]
    Cinp = Xp.shape[1]
    Ep = Srow.shape[0]
    Cp = pp['w1_rel'].shape[1]
    Hp = pp['mlp_w1a'].shape[1]
    SL = pp['mlp_w2'].shape[1]

    def full(shape):
        return pl.BlockSpec(shape, lambda i, _s=shape: (0,) * len(_s))

    h_pad, score_pad = pl.pallas_call(
        _fused_causal_att_kernel,
        out_shape=(jax.ShapeDtypeStruct((Np, Cp), jnp.float32),
                   jax.ShapeDtypeStruct((Ep, SL), jnp.float32)),
        grid=(1,),
        in_specs=[
            full((Np, Np)), full((Np, Cinp)), full((Ep, Np)), full((Ep, Np)),
            full((Cinp, Cp)), full((Cinp, Cp)), full((1, Cp)),
            full((Cp, Cp)), full((Cp, Cp)), full((1, Cp)),
            full((Cp, Hp)), full((Cp, Hp)), full((1, Hp)),
            full((Hp, SL)), full((1, SL)),
        ],
        out_specs=(full((Np, Cp)), full((Ep, SL))),
        compiler_params=pltpu.CompilerParams(dimension_semantics=("arbitrary",)),
    )(A, Xp, Srow, Scol,
      pp['w1_rel'], pp['w1_root'], pp['b1'],
      pp['w2_rel'], pp['w2_root'], pp['b2'],
      pp['mlp_w1a'], pp['mlp_w1b'], pp['mlp_b1'],
      pp['mlp_w2'], pp['mlp_b2'])
    return h_pad, score_pad


# ------------------------------ parameters ------------------------------------

def init_params(key, channels, in_features=5):
    C = channels
    keys = jax.random.split(key, 6)

    def lin(k, fan_in, fan_out):
        bound = 1.0 / math.sqrt(fan_in)
        kw, kb = jax.random.split(k)
        w = jax.random.uniform(kw, (fan_in, fan_out), jnp.float32, -bound, bound)
        b = jax.random.uniform(kb, (1, fan_out), jnp.float32, -bound, bound)
        return w, b

    p = {}
    p['conv1_wrel'], p['conv1_b'] = lin(keys[0], in_features, C)   # lin_rel (has bias)
    p['conv1_wroot'], _ = lin(keys[1], in_features, C)             # lin_root (no bias)
    p['conv2_wrel'], p['conv2_b'] = lin(keys[2], C, C)
    p['conv2_wroot'], _ = lin(keys[3], C, C)
    p['mlp_w1'], p['mlp_b1'] = lin(keys[4], 2 * C, 4 * C)
    p['mlp_w2'], p['mlp_b2'] = lin(keys[5], 4 * C, 1)
    return p


def pad_params(params, *, in_features=5, channels=32):
    """Pad once to 128-lane-aligned shapes; matmul operands in bf16, biases f32."""
    C = channels
    Cinp = _round_up(in_features, 128)
    Cp = _round_up(C, 128)
    Hp = _round_up(4 * C, 128)
    SL = 128                       # score output lanes (only lane 0 is real)
    bf16 = jnp.bfloat16

    pp = {}
    pp['w1_rel'] = _pad_to(params['conv1_wrel'], (Cinp, Cp)).astype(bf16)
    pp['w1_root'] = _pad_to(params['conv1_wroot'], (Cinp, Cp)).astype(bf16)
    pp['b1'] = _pad_to(params['conv1_b'], (1, Cp))
    pp['w2_rel'] = _pad_to(params['conv2_wrel'], (Cp, Cp)).astype(bf16)
    pp['w2_root'] = _pad_to(params['conv2_wroot'], (Cp, Cp)).astype(bf16)
    pp['b2'] = _pad_to(params['conv2_b'], (1, Cp))
    w1 = params['mlp_w1']                      # (2C, 4C) -> split for fused gather-matmul
    pp['mlp_w1a'] = _pad_to(w1[:C], (Cp, Hp)).astype(bf16)
    pp['mlp_w1b'] = _pad_to(w1[C:], (Cp, Hp)).astype(bf16)
    pp['mlp_b1'] = _pad_to(params['mlp_b1'], (1, Hp))
    pp['mlp_w2'] = _pad_to(params['mlp_w2'], (Hp, SL)).astype(bf16)
    pp['mlp_b2'] = _pad_to(params['mlp_b2'], (1, SL))
    return pp


# ------------------------------ forward pass -----------------------------------

def causal_att_net_forward(padded_params, x, edge_index, edge_attr, batch, ratio, *,
                           channels):
    N = x.shape[0]
    E = edge_attr.shape[0]
    C = channels
    Cinp = padded_params['w1_rel'].shape[0]

    Np = _round_up(N, 128)     # lane dim of A / Srow / Scol -> multiple of 128
    Ep = _round_up(E, 8)       # sublane dim only -> multiple of 8

    row, col = edge_index[0], edge_index[1]    # source, target (PyG convention)

    # dense adjacency A[dst, src] = edge_weight (duplicate edges sum), built padded
    A = (jnp.zeros((Np, Np), jnp.float32)
         .at[col, row].add(edge_attr)).astype(jnp.bfloat16)
    Xp = _pad_to(x, (Np, Cinp)).astype(jnp.bfloat16)

    # one-hot gather operators so h[row]/h[col] are computed on the MXU in-kernel
    Srow = _pad_to(jax.nn.one_hot(row, Np, dtype=jnp.bfloat16), (Ep, Np))
    Scol = _pad_to(jax.nn.one_hot(col, Np, dtype=jnp.bfloat16), (Ep, Np))

    h_pad, score_pad = fused_causal_att(A, Xp, Srow, Scol, padded_params)
    h = h_pad[:N, :C]
    edge_score = score_pad[:E, 0]

    # ---- split_graph: keep top ceil(ratio * E_g) edges per graph --------------
    # O(E log E) sort-based per-graph rank (ties: equal score -> lower index wins)
    edge_batch = batch[row]
    perm1 = jnp.argsort(-edge_score)                       # score desc, stable
    perm = perm1[jnp.argsort(edge_batch[perm1])]           # group by graph, stable
    sorted_batch = edge_batch[perm]
    graph_start = jnp.searchsorted(sorted_batch, jnp.arange(N), side='left')
    rank_sorted = jnp.arange(E) - graph_start[sorted_batch]
    rank = jnp.zeros((E,), jnp.int32).at[perm].set(rank_sorted.astype(jnp.int32))

    counts = jax.ops.segment_sum(jnp.ones((E,), jnp.int32), edge_batch,
                                 num_segments=N)
    k = jnp.ceil(ratio * counts.astype(jnp.float32)).astype(jnp.int32)
    causal_mask = rank < k[edge_batch]
    conf_mask = jnp.logical_not(causal_mask)

    causal_edge_weight = jnp.where(causal_mask, edge_score, 0.0)
    conf_edge_weight = jnp.where(conf_mask, -edge_score, 0.0)
    causal_edge_attr = jnp.where(causal_mask, edge_attr, 0.0)
    conf_edge_attr = jnp.where(conf_mask, edge_attr, 0.0)

    # TODO(synk): relabel() / edge compaction produce dynamically-sized node & edge
    # sets; no fixed-shape JAX/Pallas equivalent, so we return full-size tensors
    # plus boolean selection masks instead of compacted/relabeled subgraphs.
    causal = (h, edge_index, causal_edge_attr, causal_edge_weight, batch, causal_mask)
    conf = (h, edge_index, conf_edge_attr, conf_edge_weight, batch, conf_mask)
    return causal, conf, edge_score


# --------------------------------- main -----------------------------------------

if __name__ == "__main__":
    key = jax.random.PRNGKey(0)
    kx, ks0, kd0, ks1, kd1, ka, kp = jax.random.split(key, 7)

    N, E, C = 16, 48, 32            # 2 graphs of 8 nodes each, 24 edges per graph
    IN_FEATURES = 5
    x = jax.random.normal(kx, (N, IN_FEATURES), jnp.float32)   # superpixel features
    src0 = jax.random.randint(ks0, (E // 2,), 0, 8)
    dst0 = jax.random.randint(kd0, (E // 2,), 0, 8)
    src1 = jax.random.randint(ks1, (E // 2,), 8, 16)
    dst1 = jax.random.randint(kd1, (E // 2,), 8, 16)
    edge_index = jnp.stack([jnp.concatenate([src0, src1]),
                            jnp.concatenate([dst0, dst1])]).astype(jnp.int32)
    edge_attr = jax.random.uniform(ka, (E,), jnp.float32)
    batch = jnp.concatenate([jnp.zeros(8, jnp.int32), jnp.ones(8, jnp.int32)])

    params = init_params(kp, C, in_features=IN_FEATURES)
    padded = pad_params(params, in_features=IN_FEATURES, channels=C)   # pad once
    ratio = 0.5

    fwd = jax.jit(functools.partial(causal_att_net_forward, ratio=ratio, channels=C))
    causal, conf, edge_score = fwd(padded, x, edge_index, edge_attr, batch)
    jax.block_until_ready(edge_score)
    jax.block_until_ready(causal)
    jax.block_until_ready(conf)
    print("KERNEL_OK")
</pallas_src>

<mosaic_0001>
module attributes {stable_mosaic.version = 11 : i64} {
  func.func private @main(%arg0: i32) attributes {dimension_semantics = [#tpu.dimension_semantics<core_parallel>], iteration_bounds = array<i64: 2>, tpu.core_type = #tpu.core_type<sc_scalar_subcore>, window_params = []} {
    return
  }
}

module attributes {stable_mosaic.version = 11 : i64} {
  func.func private @main(%arg0: i32) attributes {dimension_semantics = [#tpu.dimension_semantics<core_parallel>], iteration_bounds = array<i64: 2>, tpu.core_type = #tpu.core_type<sc_scalar_subcore>, window_params = []} {
    return
  }
}

module attributes {stable_mosaic.version = 11 : i64} {
  func.func @_fused_causal_att_kernel(%arg0: i32, %arg1: memref<128x128xbf16, #tpu.memory_space<vmem>>, %arg2: memref<128x128xbf16, #tpu.memory_space<vmem>>, %arg3: memref<48x128xbf16, #tpu.memory_space<vmem>>, %arg4: memref<48x128xbf16, #tpu.memory_space<vmem>>, %arg5: memref<128x128xbf16, #tpu.memory_space<vmem>>, %arg6: memref<128x128xbf16, #tpu.memory_space<vmem>>, %arg7: memref<1x128xf32, #tpu.memory_space<vmem>>, %arg8: memref<128x128xbf16, #tpu.memory_space<vmem>>, %arg9: memref<128x128xbf16, #tpu.memory_space<vmem>>, %arg10: memref<1x128xf32, #tpu.memory_space<vmem>>, %arg11: memref<128x128xbf16, #tpu.memory_space<vmem>>, %arg12: memref<128x128xbf16, #tpu.memory_space<vmem>>, %arg13: memref<1x128xf32, #tpu.memory_space<vmem>>, %arg14: memref<128x128xbf16, #tpu.memory_space<vmem>>, %arg15: memref<1x128xf32, #tpu.memory_space<vmem>>, %arg16: memref<128x128xf32, #tpu.memory_space<vmem>>, %arg17: memref<48x128xf32, #tpu.memory_space<vmem>>) attributes {dimension_semantics = [#tpu.dimension_semantics<arbitrary>], iteration_bounds = array<i64: 1>, scalar_prefetch = 0 : i64, scratch_operands = 0 : i64, tpu.core_type = #tpu.core_type<tc>, window_params = [{pipeline_mode = #tpu.pipeline_mode<synchronous>, transform_indices = @transform_0, window_bounds = array<i64: 128, 128>}, {pipeline_mode = #tpu.pipeline_mode<synchronous>, transform_indices = @transform_1, window_bounds = array<i64: 128, 128>}, {pipeline_mode = #tpu.pipeline_mode<synchronous>, transform_indices = @transform_2, window_bounds = array<i64: 48, 128>}, {pipeline_mode = #tpu.pipeline_mode<synchronous>, transform_indices = @transform_3, window_bounds = array<i64: 48, 128>}, {pipeline_mode = #tpu.pipeline_mode<synchronous>, transform_indices = @transform_4, window_bounds = array<i64: 128, 128>}, {pipeline_mode = #tpu.pipeline_mode<synchronous>, transform_indices = @transform_5, window_bounds = array<i64: 128, 128>}, {pipeline_mode = #tpu.pipeline_mode<synchronous>, transform_indices = @transform_6, window_bounds = array<i64: 1, 128>}, {pipeline_mode = #tpu.pipeline_mode<synchronous>, transform_indices = @transform_7, window_bounds = array<i64: 128, 128>}, {pipeline_mode = #tpu.pipeline_mode<synchronous>, transform_indices = @transform_8, window_bounds = array<i64: 128, 128>}, {pipeline_mode = #tpu.pipeline_mode<synchronous>, transform_indices = @transform_9, window_bounds = array<i64: 1, 128>}, {pipeline_mode = #tpu.pipeline_mode<synchronous>, transform_indices = @transform_10, window_bounds = array<i64: 128, 128>}, {pipeline_mode = #tpu.pipeline_mode<synchronous>, transform_indices = @transform_11, window_bounds = array<i64: 128, 128>}, {pipeline_mode = #tpu.pipeline_mode<synchronous>, transform_indices = @transform_12, window_bounds = array<i64: 1, 128>}, {pipeline_mode = #tpu.pipeline_mode<synchronous>, transform_indices = @transform_13, window_bounds = array<i64: 128, 128>}, {pipeline_mode = #tpu.pipeline_mode<synchronous>, transform_indices = @transform_14, window_bounds = array<i64: 1, 128>}, {pipeline_mode = #tpu.pipeline_mode<synchronous>, transform_indices = @transform_15, window_bounds = array<i64: 128, 128>}, {pipeline_mode = #tpu.pipeline_mode<synchronous>, transform_indices = @transform_16, window_bounds = array<i64: 48, 128>}]} {
    %c0 = arith.constant 0 : index
    %c0_0 = arith.constant 0 : index
    %0 = vector.load %arg1[%c0, %c0_0] : memref<128x128xbf16, #tpu.memory_space<vmem>>, vector<128x128xbf16>
    %c0_1 = arith.constant 0 : index
    %c0_2 = arith.constant 0 : index
    %1 = vector.load %arg2[%c0_1, %c0_2] : memref<128x128xbf16, #tpu.memory_space<vmem>>, vector<128x128xbf16>
    %cst = arith.constant dense<0.000000e+00> : vector<128x128xf32>
    %2 = tpu.matmul %0, %1, %cst {dimension_numbers = #tpu.dot_dimension_numbers<[1], [0], [0], [1], [0, 0, 1, 1], [], []>} : vector<128x128xbf16>, vector<128x128xbf16>, vector<128x128xf32> -> vector<128x128xf32>
    %3 = arith.truncf %2 : vector<128x128xf32> to vector<128x128xbf16>
    %c0_3 = arith.constant 0 : index
    %c0_4 = arith.constant 0 : index
    %4 = vector.load %arg5[%c0_3, %c0_4] : memref<128x128xbf16, #tpu.memory_space<vmem>>, vector<128x128xbf16>
    %cst_5 = arith.constant dense<0.000000e+00> : vector<128x128xf32>
    %5 = tpu.matmul %3, %4, %cst_5 {dimension_numbers = #tpu.dot_dimension_numbers<[1], [0], [0], [1], [0, 0, 1, 1], [], []>} : vector<128x128xbf16>, vector<128x128xbf16>, vector<128x128xf32> -> vector<128x128xf32>
    %c0_6 = arith.constant 0 : index
    %c0_7 = arith.constant 0 : index
    %6 = vector.load %arg6[%c0_6, %c0_7] : memref<128x128xbf16, #tpu.memory_space<vmem>>, vector<128x128xbf16>
    %cst_8 = arith.constant dense<0.000000e+00> : vector<128x128xf32>
    %7 = tpu.matmul %1, %6, %cst_8 {dimension_numbers = #tpu.dot_dimension_numbers<[1], [0], [0], [1], [0, 0, 1, 1], [], []>} : vector<128x128xbf16>, vector<128x128xbf16>, vector<128x128xf32> -> vector<128x128xf32>
    %8 = arith.addf %5, %7 : vector<128x128xf32>
    %c0_9 = arith.constant 0 : index
    %c0_10 = arith.constant 0 : index
    %9 = vector.load %arg7[%c0_9, %c0_10] : memref<1x128xf32, #tpu.memory_space<vmem>>, vector<1x128xf32>
    %10 = vector.broadcast %9 : vector<1x128xf32> to vector<128x128xf32>
    %11 = arith.addf %8, %10 : vector<128x128xf32>
    %cst_11 = arith.constant 0.000000e+00 : f32
    %12 = vector.broadcast %cst_11 : f32 to vector<128x128xf32>
    %13 = arith.maximumf %11, %12 : vector<128x128xf32>
    %14 = arith.truncf %13 : vector<128x128xf32> to vector<128x128xbf16>
    %cst_12 = arith.constant dense<0.000000e+00> : vector<128x128xf32>
    %15 = tpu.matmul %0, %14, %cst_12 {dimension_numbers = #tpu.dot_dimension_numbers<[1], [0], [0], [1], [0, 0, 1, 1], [], []>} : vector<128x128xbf16>, vector<128x128xbf16>, vector<128x128xf32> -> vector<128x128xf32>
    %16 = arith.truncf %15 : vector<128x128xf32> to vector<128x128xbf16>
    %c0_13 = arith.constant 0 : index
    %c0_14 = arith.constant 0 : index
    %17 = vector.load %arg8[%c0_13, %c0_14] : memref<128x128xbf16, #tpu.memory_space<vmem>>, vector<128x128xbf16>
    %cst_15 = arith.constant dense<0.000000e+00> : vector<128x128xf32>
    %18 = tpu.matmul %16, %17, %cst_15 {dimension_numbers = #tpu.dot_dimension_numbers<[1], [0], [0], [1], [0, 0, 1, 1], [], []>} : vector<128x128xbf16>, vector<128x128xbf16>, vector<128x128xf32> -> vector<128x128xf32>
    %c0_16 = arith.constant 0 : index
    %c0_17 = arith.constant 0 : index
    %19 = vector.load %arg9[%c0_16, %c0_17] : memref<128x128xbf16, #tpu.memory_space<vmem>>, vector<128x128xbf16>
    %cst_18 = arith.constant dense<0.000000e+00> : vector<128x128xf32>
    %20 = tpu.matmul %14, %19, %cst_18 {dimension_numbers = #tpu.dot_dimension_numbers<[1], [0], [0], [1], [0, 0, 1, 1], [], []>} : vector<128x128xbf16>, vector<128x128xbf16>, vector<128x128xf32> -> vector<128x128xf32>
    %21 = arith.addf %18, %20 : vector<128x128xf32>
    %c0_19 = arith.constant 0 : index
    %c0_20 = arith.constant 0 : index
    %22 = vector.load %arg10[%c0_19, %c0_20] : memref<1x128xf32, #tpu.memory_space<vmem>>, vector<1x128xf32>
    %23 = vector.broadcast %22 : vector<1x128xf32> to vector<128x128xf32>
    %24 = arith.addf %21, %23 : vector<128x128xf32>
    %c0_21 = arith.constant 0 : index
    %c0_22 = arith.constant 0 : index
    %25 = vector.load %arg16[%c0_21, %c0_22] : memref<128x128xf32, #tpu.memory_space<vmem>>, vector<128x128xf32>
    tpu.vector_store %arg16[%c0_21, %c0_22], %24 {strides = array<i32>} : memref<128x128xf32, #tpu.memory_space<vmem>>, vector<128x128xf32>,
    %26 = arith.truncf %24 : vector<128x128xf32> to vector<128x128xbf16>
    %c0_23 = arith.constant 0 : index
    %c0_24 = arith.constant 0 : index
    %27 = vector.load %arg3[%c0_23, %c0_24] : memref<48x128xbf16, #tpu.memory_space<vmem>>, vector<48x128xbf16>
    %cst_25 = arith.constant dense<0.000000e+00> : vector<48x128xf32>
    %28 = tpu.matmul %27, %26, %cst_25 {dimension_numbers = #tpu.dot_dimension_numbers<[1], [0], [0], [1], [0, 0, 1, 1], [], []>} : vector<48x128xbf16>, vector<128x128xbf16>, vector<48x128xf32> -> vector<48x128xf32>
    %29 = arith.truncf %28 : vector<48x128xf32> to vector<48x128xbf16>
    %c0_26 = arith.constant 0 : index
    %c0_27 = arith.constant 0 : index
    %30 = vector.load %arg4[%c0_26, %c0_27] : memref<48x128xbf16, #tpu.memory_space<vmem>>, vector<48x128xbf16>
    %cst_28 = arith.constant dense<0.000000e+00> : vector<48x128xf32>
    %31 = tpu.matmul %30, %26, %cst_28 {dimension_numbers = #tpu.dot_dimension_numbers<[1], [0], [0], [1], [0, 0, 1, 1], [], []>} : vector<48x128xbf16>, vector<128x128xbf16>, vector<48x128xf32> -> vector<48x128xf32>
    %32 = arith.truncf %31 : vector<48x128xf32> to vector<48x128xbf16>
    %c0_29 = arith.constant 0 : index
    %c0_30 = arith.constant 0 : index
    %33 = vector.load %arg11[%c0_29, %c0_30] : memref<128x128xbf16, #tpu.memory_space<vmem>>, vector<128x128xbf16>
    %cst_31 = arith.constant dense<0.000000e+00> : vector<48x128xf32>
    %34 = tpu.matmul %29, %33, %cst_31 {dimension_numbers = #tpu.dot_dimension_numbers<[1], [0], [0], [1], [0, 0, 1, 1], [], []>} : vector<48x128xbf16>, vector<128x128xbf16>, vector<48x128xf32> -> vector<48x128xf32>
    %c0_32 = arith.constant 0 : index
    %c0_33 = arith.constant 0 : index
    %35 = vector.load %arg12[%c0_32, %c0_33] : memref<128x128xbf16, #tpu.memory_space<vmem>>, vector<128x128xbf16>
    %cst_34 = arith.constant dense<0.000000e+00> : vector<48x128xf32>
    %36 = tpu.matmul %32, %35, %cst_34 {dimension_numbers = #tpu.dot_dimension_numbers<[1], [0], [0], [1], [0, 0, 1, 1], [], []>} : vector<48x128xbf16>, vector<128x128xbf16>, vector<48x128xf32> -> vector<48x128xf32>
    %37 = arith.addf %34, %36 : vector<48x128xf32>
    %c0_35 = arith.constant 0 : index
    %c0_36 = arith.constant 0 : index
    %38 = vector.load %arg13[%c0_35, %c0_36] : memref<1x128xf32, #tpu.memory_space<vmem>>, vector<1x128xf32>
    %39 = vector.broadcast %38 : vector<1x128xf32> to vector<48x128xf32>
    %40 = arith.addf %37, %39 : vector<48x128xf32>
    %cst_37 = arith.constant 0.000000e+00 : f32
    %41 = vector.broadcast %cst_37 : f32 to vector<48x128xf32>
    %42 = arith.maximumf %40, %41 : vector<48x128xf32>
    %43 = arith.truncf %42 : vector<48x128xf32> to vector<48x128xbf16>
    %c0_38 = arith.constant 0 : index
    %c0_39 = arith.constant 0 : index
    %44 = vector.load %arg14[%c0_38, %c0_39] : memref<128x128xbf16, #tpu.memory_space<vmem>>, vector<128x128xbf16>
    %cst_40 = arith.constant dense<0.000000e+00> : vector<48x128xf32>
    %45 = tpu.matmul %43, %44, %cst_40 {dimension_numbers = #tpu.dot_dimension_numbers<[1], [0], [0], [1], [0, 0, 1, 1], [], []>} : vector<48x128xbf16>, vector<128x128xbf16>, vector<48x128xf32> -> vector<48x128xf32>
    %c0_41 = arith.constant 0 : index
    %c0_42 = arith.constant 0 : index
    %46 = vector.load %arg15[%c0_41, %c0_42] : memref<1x128xf32, #tpu.memory_space<vmem>>, vector<1x128xf32>
    %47 = vector.broadcast %46 : vector<1x128xf32> to vector<48x128xf32>
    %48 = arith.addf %45, %47 : vector<48x128xf32>
    %c0_43 = arith.constant 0 : index
    %c0_44 = arith.constant 0 : index
    %49 = vector.load %arg17[%c0_43, %c0_44] : memref<48x128xf32, #tpu.memory_space<vmem>>, vector<48x128xf32>
    tpu.vector_store %arg17[%c0_43, %c0_44], %48 {strides = array<i32>} : memref<48x128xf32, #tpu.memory_space<vmem>>, vector<48x128xf32>,
    return
  }
  func.func @transform_0(%arg0: i32) -> (i32, i32) {
    %c0_i32 = arith.constant 0 : i32
    %c0_i32_0 = arith.constant 0 : i32
    %c0_i32_1 = arith.constant 0 : i32
    return %c0_i32, %c0_i32_0 : i32, i32
  }
  func.func @transform_1(%arg0: i32) -> (i32, i32) {
    %c0_i32 = arith.constant 0 : i32
    %c0_i32_0 = arith.constant 0 : i32
    %c0_i32_1 = arith.constant 0 : i32
    return %c0_i32, %c0_i32_0 : i32, i32
  }
  func.func @transform_2(%arg0: i32) -> (i32, i32) {
    %c0_i32 = arith.constant 0 : i32
    %c0_i32_0 = arith.constant 0 : i32
    %c0_i32_1 = arith.constant 0 : i32
    return %c0_i32, %c0_i32_0 : i32, i32
  }
  func.func @transform_3(%arg0: i32) -> (i32, i32) {
    %c0_i32 = arith.constant 0 : i32
    %c0_i32_0 = arith.constant 0 : i32
    %c0_i32_1 = arith.constant 0 : i32
    return %c0_i32, %c0_i32_0 : i32, i32
  }
  func.func @transform_4(%arg0: i32) -> (i32, i32) {
    %c0_i32 = arith.constant 0 : i32
    %c0_i32_0 = arith.constant 0 : i32
    %c0_i32_1 = arith.constant 0 : i32
    return %c0_i32, %c0_i32_0 : i32, i32
  }
  func.func @transform_5(%arg0: i32) -> (i32, i32) {
    %c0_i32 = arith.constant 0 : i32
    %c0_i32_0 = arith.constant 0 : i32
    %c0_i32_1 = arith.constant 0 : i32
    return %c0_i32, %c0_i32_0 : i32, i32
  }
  func.func @transform_6(%arg0: i32) -> (i32, i32) {
    %c0_i32 = arith.constant 0 : i32
    %c0_i32_0 = arith.constant 0 : i32
    %c0_i32_1 = arith.constant 0 : i32
    return %c0_i32, %c0_i32_0 : i32, i32
  }
  func.func @transform_7(%arg0: i32) -> (i32, i32) {
    %c0_i32 = arith.constant 0 : i32
    %c0_i32_0 = arith.constant 0 : i32
    %c0_i32_1 = arith.constant 0 : i32
    return %c0_i32, %c0_i32_0 : i32, i32
  }
  func.func @transform_8(%arg0: i32) -> (i32, i32) {
    %c0_i32 = arith.constant 0 : i32
    %c0_i32_0 = arith.constant 0 : i32
    %c0_i32_1 = arith.constant 0 : i32
    return %c0_i32, %c0_i32_0 : i32, i32
  }
  func.func @transform_9(%arg0: i32) -> (i32, i32) {
    %c0_i32 = arith.constant 0 : i32
    %c0_i32_0 = arith.constant 0 : i32
    %c0_i32_1 = arith.constant 0 : i32
    return %c0_i32, %c0_i32_0 : i32, i32
  }
  func.func @transform_10(%arg0: i32) -> (i32, i32) {
    %c0_i32 = arith.constant 0 : i32
    %c0_i32_0 = arith.constant 0 : i32
    %c0_i32_1 = arith.constant 0 : i32
    return %c0_i32, %c0_i32_0 : i32, i32
  }
  func.func @transform_11(%arg0: i32) -> (i32, i32) {
    %c0_i32 = arith.constant 0 : i32
    %c0_i32_0 = arith.constant 0 : i32
    %c0_i32_1 = arith.constant 0 : i32
    return %c0_i32, %c0_i32_0 : i32, i32
  }
  func.func @transform_12(%arg0: i32) -> (i32, i32) {
    %c0_i32 = arith.constant 0 : i32
    %c0_i32_0 = arith.constant 0 : i32
    %c0_i32_1 = arith.constant 0 : i32
    return %c0_i32, %c0_i32_0 : i32, i32
  }
  func.func @transform_13(%arg0: i32) -> (i32, i32) {
    %c0_i32 = arith.constant 0 : i32
    %c0_i32_0 = arith.constant 0 : i32
    %c0_i32_1 = arith.constant 0 : i32
    return %c0_i32, %c0_i32_0 : i32, i32
  }
  func.func @transform_14(%arg0: i32) -> (i32, i32) {
    %c0_i32 = arith.constant 0 : i32
    %c0_i32_0 = arith.constant 0 : i32
    %c0_i32_1 = arith.constant 0 : i32
    return %c0_i32, %c0_i32_0 : i32, i32
  }
  func.func @transform_15(%arg0: i32) -> (i32, i32) {
    %c0_i32 = arith.constant 0 : i32
    %c0_i32_0 = arith.constant 0 : i32
    %c0_i32_1 = arith.constant 0 : i32
    return %c0_i32, %c0_i32_0 : i32, i32
  }
  func.func @transform_16(%arg0: i32) -> (i32, i32) {
    %c0_i32 = arith.constant 0 : i32
    %c0_i32_0 = arith.constant 0 : i32
    %c0_i32_1 = arith.constant 0 : i32
    return %c0_i32, %c0_i32_0 : i32, i32
  }
}

</mosaic_0001>

<bundles_post_ra>
// kernel: custom-call.2
= control target key start
LH: loop header
LB: loop body
LE: loop exit
PB: predicated region body
PF: predicated region fallthrough
CT: control target
= control target key end

     0   :  { %s6_s0 = inlined_call_operand.vmem [shape: u32[16], index: 0, kind: output, shape index: {}]  }

// kernel: neg.2
= control target key start
LH: loop header
LB: loop body
LE: loop exit
PB: predicated region body
PF: predicated region fallthrough
CT: control target
= control target key end

     0   :  { %s24_s0 = inlined_call_operand.vmem [shape: f32[48], index: 0, kind: input, shape index: {}]   ;;  %s25_s1 = inlined_call_operand.vmem [shape: f32[48], index: 1, kind: output, shape index: {}]  }
   0x1   :  { %v2_v0 = vld [vmem:[%s24_s0] sm:$0x1] }
   0x2   :  { %v5_v1 = vxor.u32 2147483648, %v2_v0 }
   0x4   :  { %7 = vst [vmem:[%s25_s1] sm:$0x1] %v5_v1 }

// kernel: causal_att_net_forward.1
= control target key start
LH: loop header
LB: loop body
LE: loop exit
PB: predicated region body
PF: predicated region fallthrough
CT: control target
= control target key end

     0   :  { %vm2397_vm0 = vmmov 0   ;;  %s2997_s1 = inlined_call_operand.vmem [shape: bf16[128,128], index: 1, kind: input, shape index: {}]   ;;  %s2998_s0 = inlined_call_operand.vmem [shape: bf16[128,128], index: 0, kind: input, shape index: {}]   ;;  %s2999_s5 = inlined_call_operand.vmem [shape: bf16[128,128], index: 5, kind: input, shape index: {}]   ;;  %s3000_s4 = inlined_call_operand.vmem [shape: bf16[128,128], index: 4, kind: input, shape index: {}]   ;;  %s3001_s8 = inlined_call_operand.vmem [shape: bf16[128,128], index: 8, kind: input, shape index: {}]   ;;  %s3002_s7 = inlined_call_operand.vmem [shape: bf16[128,128], index: 7, kind: input, shape index: {}]   ;;  %s3003_s6 = inlined_call_operand.vmem [shape: f32[1,128], index: 6, kind: input, shape index: {}]   ;;  %s3004_s2 = inlined_call_operand.vmem [shape: bf16[48,128], index: 2, kind: input, shape index: {}]   ;;  %s3005_s3 = inlined_call_operand.vmem [shape: bf16[48,128], index: 3, kind: input, shape index: {}]   ;;  %s3006_s10 = inlined_call_operand.vmem [shape: bf16[128,128], index: 10, kind: input, shape index: {}]   ;;  %s3007_s9 = inlined_call_operand.vmem [shape: f32[1,128], index: 9, kind: input, shape index: {}]   ;;  %s3008_s15 = inlined_call_operand.vmem [shape: f32[128,128], index: 15, kind: output, shape index: {0}]   ;;  %s3009_s11 = inlined_call_operand.vmem [shape: bf16[128,128], index: 11, kind: input, shape index: {}]   ;;  %s3010_s13 = inlined_call_operand.vmem [shape: bf16[128,128], index: 13, kind: input, shape index: {}]   ;;  %s3011_s12 = inlined_call_operand.vmem [shape: f32[1,128], index: 12, kind: input, shape index: {}]   ;;  %s3012_s14 = inlined_call_operand.vmem [shape: f32[1,128], index: 14, kind: input, shape index: {}]   ;;  %s3013_s16 = inlined_call_operand.vmem [shape: f32[48,128], index: 16, kind: output, shape index: {1}]  }
   0x1   :  { %3015 = sst [smem:[#allocation2_spill]] %s2997_s1  ;;  %v2507_v4 = vld [vmem:[%s2998_s0] sm:$0xff]   ;;  %v2335_v8 = vld [vmem:[%s2999_s5 + $0x8] sm:$0xff]   ;;  %v2336_v10 = vld [vmem:[%s2999_s5 + $0x10] sm:$0xff]  }
   0x2   :  { %s3016_s23 = sld [smem:[#allocation2_spill]]  ;;  %1952 = vmatprep.mubr.bf16.mxu0 %v2507_v4  ;;  %v2334_v7 = vld [vmem:[%s2999_s5] sm:$0xff]   ;;  %v2337_v12 = vld [vmem:[%s2999_s5 + $0x18] sm:$0xff]   ;;  %v2558_v14 = vld [vmem:[%s2998_s0 + $0x8] sm:$0xff]  }
   0x3   :  { %1968 = vmatprep.subr.bf16.mxu1 %v2334_v7  ;;  %v2338_v13 = vld [vmem:[%s2999_s5 + $0x20] sm:$0xff]   ;;  %v2564_v15 = vld [vmem:[%s2998_s0 + $0x10] sm:$0xff]   ;;  %v2339_v16 = vld [vmem:[%s2999_s5 + $0x28] sm:$0xff]  }
   0x4   :  { %1969 = vmatpush3.bf16.msra.mxu1 %v2334_v7  ;;  %v2340_v17 = vld [vmem:[%s2999_s5 + $0x30] sm:$0xff]   ;;  %v2577_v18 = vld [vmem:[%s2998_s0 + $0x18] sm:$0xff]   ;;  %v2582_v19 = vld [vmem:[%s2998_s0 + $0x20] sm:$0xff]  }
   0x5   :  { %1970 = vmatprep.subr.bf16.mxu1 %v2335_v8  ;;  %v2341_v20 = vld [vmem:[%s2999_s5 + $0x38] sm:$0xff]   ;;  %v2342_v21 = vld [vmem:[%s3000_s4] sm:$0xff]   ;;  %v2595_v22 = vld [vmem:[%s2998_s0 + $0x28] sm:$0xff]  }
   0x6   :  { %v2600_v23 = vld [vmem:[%s2998_s0 + $0x30] sm:$0xff]   ;;  %v2343_v24 = vld [vmem:[%s3000_s4 + $0x8] sm:$0xff]   ;;  %v2615_v26 = vld [vmem:[%s2998_s0 + $0x38] sm:$0xff]  }
   0x7   :  { %v2344_v25 = vld [vmem:[%s3000_s4 + $0x10] sm:$0xff]   ;;  %v2345_v27 = vld [vmem:[%s3000_s4 + $0x18] sm:$0xff]   ;;  %v2346_v28 = vld [vmem:[%s3000_s4 + $0x20] sm:$0xff]  }
   0x8   :  { %v2318_v0 = vld [vmem:[%s3016_s23] sm:$0xff]   ;;  %v2489_v1 = vld [vmem:[%s3016_s23 + $0x8] sm:$0xff]   ;;  %v2495_v2 = vld [vmem:[%s3016_s23 + $0x10] sm:$0xff]   ;;  %1971 = vmatpush3.bf16.msra.mxu1 %v2335_v8 }
   0x9   :  { %1936 = vmatprep.subr.bf16.mxu0 %v2318_v0  ;;  %1984 = vmatprep.mubr.bf16.mxu1 %v2318_v0  ;;  %v2501_v3 = vld [vmem:[%s3016_s23 + $0x18] sm:$0xff]   ;;  %v2515_v5 = vld [vmem:[%s3016_s23 + $0x20] sm:$0xff]   ;;  %v2521_v6 = vld [vmem:[%s3016_s23 + $0x28] sm:$0xff]  }
   0xa   :  { %1937 = vmatpush3.bf16.msra.mxu0 %v2318_v0  ;;  %v2534_v9 = vld [vmem:[%s3016_s23 + $0x30] sm:$0xff]   ;;  %v2544_v11 = vld [vmem:[%s3016_s23 + $0x38] sm:$0xff]   ;;  %1972 = vmatprep.subr.bf16.mxu1 %v2336_v10  ;;  %v2347_v29 = vld [vmem:[%s3000_s4 + $0x28] sm:$0xff]  }
   0xb   :  { %1938 = vmatprep.subr.bf16.mxu0 %v2489_v1  ;;  %v2348_v30 = vld [vmem:[%s3000_s4 + $0x30] sm:$0xff]   ;;  %v2349_v31 = vld [vmem:[%s3000_s4 + $0x38] sm:$0xff]   ;;  %v1735_v56 = vld [vmem:[%s3003_s6] ss:$0 sm:$0xff] }
   0xc   :  { %1973 = vmatpush3.bf16.msra.mxu1 %v2336_v10 }
   0xd   :  { %1974 = vmatprep.subr.bf16.mxu1 %v2337_v12 }
   0xe   :  { %1939 = vmatpush3.bf16.msra.mxu0 %v2489_v1 }
   0xf   :  { %1940 = vmatprep.subr.bf16.mxu0 %v2495_v2 }
  0x10   :  { %1975 = vmatpush3.bf16.msra.mxu1 %v2337_v12 }
  0x11   :  { %1976 = vmatprep.subr.bf16.mxu1 %v2338_v13 }
  0x12   :  { %1941 = vmatpush3.bf16.msra.mxu0 %v2495_v2 }
  0x13   :  { %1942 = vmatprep.subr.bf16.mxu0 %v2501_v3 }
  0x14   :  { %1977 = vmatpush3.bf16.msra.mxu1 %v2338_v13 }
  0x15   :  { %1978 = vmatprep.subr.bf16.mxu1 %v2339_v16 }
  0x16   :  { %1943 = vmatpush3.bf16.msra.mxu0 %v2501_v3 }
  0x17   :  { %1944 = vmatprep.subr.bf16.mxu0 %v2515_v5 }
  0x18   :  { %1979 = vmatpush3.bf16.msra.mxu1 %v2339_v16 }
  0x19   :  { %1980 = vmatprep.subr.bf16.mxu1 %v2340_v17 }
  0x1a   :  { %1945 = vmatpush3.bf16.msra.mxu0 %v2515_v5 }
  0x1b   :  { %1946 = vmatprep.subr.bf16.mxu0 %v2521_v6 }
  0x1c   :  { %1981 = vmatpush3.bf16.msra.mxu1 %v2340_v17 }
  0x1d   :  { %1982 = vmatprep.subr.bf16.mxu1 %v2341_v20 }
  0x1e   :  { %1947 = vmatpush3.bf16.msra.mxu0 %v2521_v6 }
  0x1f   :  { %1948 = vmatprep.subr.bf16.mxu0 %v2534_v9 }
  0x20   :  { %1983 = vmatpush3.bf16.msra.mxu1 %v2341_v20 }
  0x21   :  { %2000 = vmatprep.subr.bf16.mxu1 %v2342_v21 }
  0x22   :  { %1949 = vmatpush3.bf16.msra.mxu0 %v2534_v9 }
  0x23   :  { %1950 = vmatprep.subr.bf16.mxu0 %v2544_v11  ;;  %1985 = vmatmul.mubr.bf16.vlgmr.msra.gmra.mrb[0].mxu1 %v2489_v1 }
  0x24   :  { %2001 = vmatpush3.bf16.msra.mxu1 %v2342_v21  ;;  %1988 = vmatprep.mubr.bf16.mxu1 %v2495_v2 }
  0x25   :  { %2002 = vmatprep.subr.bf16.mxu1 %v2343_v24 }
  0x26   :  { %1951 = vmatpush3.bf16.msra.mxu0 %v2544_v11 }
  0x28   :  { %2003 = vmatpush3.bf16.msra.mxu1 %v2343_v24 }
  0x29   :  { %1953 = vmatmul.mubr.bf16.vlgmr.msra.gmra.mrb[0].mxu0 %v2558_v14  ;;  %2004 = vmatprep.subr.bf16.mxu1 %v2344_v25 }
  0x2a   :  { %1956 = vmatprep.mubr.bf16.mxu0 %v2564_v15 }
  0x2b   :  { %1989 = vmatmul.mubr.bf16.gmra.mrb[4].mxu1 %v2501_v3 }
  0x2c   :  { %2005 = vmatpush3.bf16.msra.mxu1 %v2344_v25  ;;  %1992 = vmatprep.mubr.bf16.mxu1 %v2515_v5 }
  0x2d   :  { %2006 = vmatprep.subr.bf16.mxu1 %v2345_v27 }
  0x30   :  { %2007 = vmatpush3.bf16.msra.mxu1 %v2345_v27 }
  0x31   :  { %1957 = vmatmul.mubr.bf16.gmra.mrb[4].mxu0 %v2577_v18  ;;  %2008 = vmatprep.subr.bf16.mxu1 %v2346_v28 }
  0x32   :  { %1960 = vmatprep.mubr.bf16.mxu0 %v2582_v19 }
  0x33   :  { %1993 = vmatmul.mubr.bf16.gmra.mrb[8].mxu1 %v2521_v6 }
  0x34   :  { %2009 = vmatpush3.bf16.msra.mxu1 %v2346_v28  ;;  %1996 = vmatprep.mubr.bf16.mxu1 %v2534_v9 }
  0x35   :  { %2010 = vmatprep.subr.bf16.mxu1 %v2347_v29 }
  0x38   :  { %2011 = vmatpush3.bf16.msra.mxu1 %v2347_v29 }
  0x39   :  { %1961 = vmatmul.mubr.bf16.gmra.mrb[8].mxu0 %v2595_v22  ;;  %2012 = vmatprep.subr.bf16.mxu1 %v2348_v30 }
  0x3a   :  { %1964 = vmatprep.mubr.bf16.mxu0 %v2600_v23 }
  0x3b   :  { %1997 = vmatmul.mubr.bf16.gmra.mrb[12].mxu1 %v2544_v11 }
  0x3c   :  { %2013 = vmatpush3.bf16.msra.mxu1 %v2348_v30 }
  0x3d   :  { %2014 = vmatprep.subr.bf16.mxu1 %v2349_v31 }
  0x40   :  { %2015 = vmatpush3.bf16.msra.mxu1 %v2349_v31 }
  0x41   :  { %1965 = vmatmul.mubr.bf16.gmra.mrb[12].mxu0 %v2615_v26 }
  0x42   :  { %2048 = vmatprep.mubr.bf16.mxu0 %v2507_v4 }
  0xfc   :  { %v1954_v32 = vpop.f32.mrb[0].mxu0 }
  0xfd   :  { %v215_v33 = vpop.f32.mrb[1].mxu0 }
  0xfe   :  { %v1955_v34 = vpop.f32.mrb[2].mxu0 }
  0xff   :  { %v279_v35 = vpack.c.bf16 %v1955_v34, %v1954_v32  ;;  %v218_v36 = vpop.f32.mrb[3].mxu0 }
 0x100   :  { %v278_v37 = vpack.c.bf16 %v218_v36, %v215_v33 }
 0x102   :  { %2016 = vmatprep.mubr.bf16.mxu1 %v278_v37 }
 0x103   :  { %2017 = vmatmul.mubr.bf16.vlgmr.msra.gmra.mrb[0].mxu1 %v279_v35 }
 0x104   :  { %v1958_v38 = vpop.f32.mrb[4].mxu0 }
 0x105   :  { %v231_v39 = vpop.f32.mrb[5].mxu0 }
 0x106   :  { %v1959_v40 = vpop.f32.mrb[6].mxu0 }
 0x107   :  { %v281_v41 = vpack.c.bf16 %v1959_v40, %v1958_v38  ;;  %v234_v42 = vpop.f32.mrb[7].mxu0 }
 0x108   :  { %v280_v43 = vpack.c.bf16 %v234_v42, %v231_v39 }
 0x10a   :  { %2020 = vmatprep.mubr.bf16.mxu1 %v280_v43 }
 0x10b   :  { %2021 = vmatmul.mubr.bf16.gmra.mrb[4].mxu1 %v281_v41 }
 0x10c   :  { %v1962_v44 = vpop.f32.mrb[8].mxu0 }
 0x10d   :  { %v247_v45 = vpop.f32.mrb[9].mxu0 }
 0x10e   :  { %v1963_v46 = vpop.f32.mrb[10].mxu0 }
 0x10f   :  { %v283_v47 = vpack.c.bf16 %v1963_v46, %v1962_v44  ;;  %v250_v48 = vpop.f32.mrb[11].mxu0 }
 0x110   :  { %v282_v49 = vpack.c.bf16 %v250_v48, %v247_v45 }
 0x112   :  { %2024 = vmatprep.mubr.bf16.mxu1 %v282_v49 }
 0x113   :  { %2025 = vmatmul.mubr.bf16.gmra.mrb[8].mxu1 %v283_v47 }
 0x114   :  { %v1966_v50 = vpop.f32.mrb[12].mxu0 }
 0x115   :  { %v263_v51 = vpop.f32.mrb[13].mxu0 }
 0x116   :  { %v1967_v52 = vpop.f32.mrb[14].mxu0 }
 0x117   :  { %v285_v53 = vpack.c.bf16 %v1967_v52, %v1966_v50  ;;  %v266_v54 = vpop.f32.mrb[15].mxu0 }
 0x118   :  { %v284_v55 = vpack.c.bf16 %v266_v54, %v263_v51 }
 0x11a   :  { %2028 = vmatprep.mubr.bf16.mxu1 %v284_v55 }
 0x11b   :  { %2029 = vmatmul.mubr.bf16.gmra.mrb[12].mxu1 %v285_v53 }
 0x1d6   :  { %v2018_v57 = vpop.f32.mrb[0].mxu1 }
 0x1d7   :  { %v617_v58 = vadd.f32 %v2018_v57, %v1735_v56  ;;  %v545_v59 = vpop.f32.mrb[1].mxu1  ;;  %v2350_v57 = vld [vmem:[%s3001_s8] sm:$0xff]  }
 0x1d8   :  { %v615_v60 = vadd.f32 %v1735_v56, %v545_v59  ;;  %v2019_v61 = vpop.f32.mrb[2].mxu1  ;;  %v2353_v59 = vld [vmem:[%s3001_s8 + $0x18] sm:$0xff]  }
 0x1d9   :  { %v618_v62 = vadd.f32 %v2019_v61, %v1735_v56  ;;  %v548_v63 = vpop.f32.mrb[3].mxu1  ;;  %v633_v1 = vmax.f32 %v617_v58, 0.0  ;;  %v2352_v58 = vld [vmem:[%s3001_s8 + $0x10] sm:$0xff]   ;;  %v2362_v61 = vld [vmem:[%s3002_s7 + $0x20] sm:$0xff]  }
 0x1da   :  { %v616_v0 = vadd.f32 %v1735_v56, %v548_v63  ;;  %v631_v3 = vmax.f32 %v615_v60, 0.0  ;;  %v2361_v60 = vld [vmem:[%s3002_s7 + $0x18] sm:$0xff]   ;;  %v2364_v63 = vld [vmem:[%s3002_s7 + $0x30] sm:$0xff]  }
 0x1db   :  { %v634_v2 = vmax.f32 %v618_v62, 0.0  ;;  %v2363_v62 = vld [vmem:[%s3002_s7 + $0x28] sm:$0xff]  }
 0x1dc   :  { %v632_v4 = vmax.f32 %v616_v0, 0.0  ;;  %v2365_v0 = vld [vmem:[%s3002_s7 + $0x38] sm:$0xff]  }
 0x1dd   :  { %v2642_v5 = vpack.c.bf16 %v634_v2, %v633_v1 }
 0x1de   :  { %v2644_v6 = vpack.c.bf16 %v632_v4, %v631_v3  ;;  %v2022_v7 = vpop.f32.mrb[4].mxu1 }
 0x1df   :  { %v621_v8 = vadd.f32 %v2022_v7, %v1735_v56  ;;  %v561_v9 = vpop.f32.mrb[5].mxu1 }
 0x1e0   :  { %v619_v10 = vadd.f32 %v1735_v56, %v561_v9  ;;  %v2023_v11 = vpop.f32.mrb[6].mxu1  ;;  %2032 = vmatprep.subr.bf16.mxu0 %v2644_v6 }
 0x1e1   :  { %v622_v12 = vadd.f32 %v2023_v11, %v1735_v56  ;;  %v564_v13 = vpop.f32.mrb[7].mxu1  ;;  %2033 = vmatpush3.bf16.msra.mxu0 %v2644_v6  ;;  %v637_v17 = vmax.f32 %v621_v8, 0.0 }
 0x1e2   :  { %v620_v16 = vadd.f32 %v1735_v56, %v564_v13  ;;  %2034 = vmatprep.subr.bf16.mxu0 %v2642_v5  ;;  %v635_v21 = vmax.f32 %v619_v10, 0.0 }
 0x1e3   :  { %v638_v20 = vmax.f32 %v622_v12, 0.0 }
 0x1e4   :  { %v636_v24 = vmax.f32 %v620_v16, 0.0 }
 0x1e5   :  { %v2649_v25 = vpack.c.bf16 %v638_v20, %v637_v17  ;;  %2035 = vmatpush3.bf16.msra.mxu0 %v2642_v5 }
 0x1e6   :  { %v2652_v27 = vpack.c.bf16 %v636_v24, %v635_v21  ;;  %v2026_v28 = vpop.f32.mrb[8].mxu1 }
 0x1e7   :  { %v625_v29 = vadd.f32 %v2026_v28, %v1735_v56  ;;  %v577_v30 = vpop.f32.mrb[9].mxu1 }
 0x1e8   :  { %v623_v31 = vadd.f32 %v1735_v56, %v577_v30  ;;  %v2027_v32 = vpop.f32.mrb[10].mxu1  ;;  %2036 = vmatprep.subr.bf16.mxu0 %v2652_v27 }
 0x1e9   :  { %v626_v33 = vadd.f32 %v2027_v32, %v1735_v56  ;;  %v580_v34 = vpop.f32.mrb[11].mxu1  ;;  %2037 = vmatpush3.bf16.msra.mxu0 %v2652_v27  ;;  %v641_v36 = vmax.f32 %v625_v29, 0.0  ;;  %v2396_v32 = vmov 0.0  }
 0x1ea   :  { %v624_v35 = vadd.f32 %v1735_v56, %v580_v34  ;;  %2038 = vmatprep.subr.bf16.mxu0 %v2649_v25  ;;  %v639_v38 = vmax.f32 %v623_v31, 0.0  ;;  %2128 = vmatprep.subr.bf16.mxu1 %v2396_v32 }
 0x1eb   :  { %v642_v37 = vmax.f32 %v626_v33, 0.0  ;;  %2144 = vmatprep.mubr.msk.bf16.mxu1 %vm2397_vm0, %v2396_v32  ;;  %v2741_v33 = vld [vmem:[%s3007_s9] ss:$0 sm:$0xff] }
 0x1ec   :  { %v640_v39 = vmax.f32 %v624_v35, 0.0 }
 0x1ed   :  { %v2657_v40 = vpack.c.bf16 %v642_v37, %v641_v36  ;;  %2039 = vmatpush3.bf16.msra.mxu0 %v2649_v25 }
 0x1ee   :  { %v2660_v41 = vpack.c.bf16 %v640_v39, %v639_v38  ;;  %v2030_v42 = vpop.f32.mrb[12].mxu1 }
 0x1ef   :  { %v629_v43 = vadd.f32 %v2030_v42, %v1735_v56  ;;  %v593_v44 = vpop.f32.mrb[13].mxu1 }
 0x1f0   :  { %v627_v45 = vadd.f32 %v1735_v56, %v593_v44  ;;  %v2031_v46 = vpop.f32.mrb[14].mxu1  ;;  %2040 = vmatprep.subr.bf16.mxu0 %v2660_v41 }
 0x1f1   :  { %v630_v47 = vadd.f32 %v2031_v46, %v1735_v56  ;;  %v596_v48 = vpop.f32.mrb[15].mxu1  ;;  %2041 = vmatpush3.bf16.msra.mxu0 %v2660_v41  ;;  %v645_v50 = vmax.f32 %v629_v43, 0.0 }
 0x1f2   :  { %v628_v49 = vadd.f32 %v1735_v56, %v596_v48  ;;  %2042 = vmatprep.subr.bf16.mxu0 %v2657_v40  ;;  %v643_v52 = vmax.f32 %v627_v45, 0.0  ;;  %v2351_v56 = vld [vmem:[%s3001_s8 + $0x8] sm:$0xff]  }
 0x1f3   :  { %v646_v51 = vmax.f32 %v630_v47, 0.0 }
 0x1f4   :  { %v644_v53 = vmax.f32 %v628_v49, 0.0 }
 0x1f5   :  { %v2665_v54 = vpack.c.bf16 %v646_v51, %v645_v50  ;;  %2043 = vmatpush3.bf16.msra.mxu0 %v2657_v40 }
 0x1f6   :  { %v653_v55 = vpack.c.bf16 %v644_v53, %v643_v52 }
 0x1f8   :  { %2044 = vmatprep.subr.bf16.mxu0 %v653_v55 }
 0x1f9   :  { %2045 = vmatpush3.bf16.msra.mxu0 %v653_v55 }
 0x1fa   :  { %2046 = vmatprep.subr.bf16.mxu0 %v2665_v54 }
 0x1fd   :  { %2047 = vmatpush3.bf16.msra.mxu0 %v2665_v54 }
 0x1fe   :  { %2064 = vmatprep.subr.bf16.mxu0 %v2350_v57 }
 0x200   :  { %2049 = vmatmul.mubr.bf16.vlgmr.msra.gmra.mrb[16].mxu0 %v2558_v14  ;;  %v2354_v14 = vld [vmem:[%s3001_s8 + $0x20] sm:$0xff]  }
 0x201   :  { %2065 = vmatpush3.bf16.msra.mxu0 %v2350_v57  ;;  %2052 = vmatprep.mubr.bf16.mxu0 %v2564_v15  ;;  %v2355_v15 = vld [vmem:[%s3001_s8 + $0x28] sm:$0xff]  }
 0x202   :  { %2066 = vmatprep.subr.bf16.mxu0 %v2351_v56 }
 0x205   :  { %2067 = vmatpush3.bf16.msra.mxu0 %v2351_v56 }
 0x206   :  { %2068 = vmatprep.subr.bf16.mxu0 %v2352_v58 }
 0x208   :  { %2053 = vmatmul.mubr.bf16.gmra.mrb[20].mxu0 %v2577_v18  ;;  %v2356_v18 = vld [vmem:[%s3001_s8 + $0x30] sm:$0xff]  }
 0x209   :  { %2069 = vmatpush3.bf16.msra.mxu0 %v2352_v58  ;;  %2056 = vmatprep.mubr.bf16.mxu0 %v2582_v19  ;;  %v2357_v19 = vld [vmem:[%s3001_s8 + $0x38] sm:$0xff]  }
 0x20a   :  { %2070 = vmatprep.subr.bf16.mxu0 %v2353_v59 }
 0x20d   :  { %2071 = vmatpush3.bf16.msra.mxu0 %v2353_v59 }
 0x20e   :  { %2072 = vmatprep.subr.bf16.mxu0 %v2354_v14 }
 0x210   :  { %2057 = vmatmul.mubr.bf16.gmra.mrb[24].mxu0 %v2595_v22  ;;  %v2358_v22 = vld [vmem:[%s3002_s7] sm:$0xff]  }
 0x211   :  { %2073 = vmatpush3.bf16.msra.mxu0 %v2354_v14  ;;  %2060 = vmatprep.mubr.bf16.mxu0 %v2600_v23  ;;  %v2359_v23 = vld [vmem:[%s3002_s7 + $0x8] sm:$0xff]  }
 0x212   :  { %2074 = vmatprep.subr.bf16.mxu0 %v2355_v15 }
 0x215   :  { %2075 = vmatpush3.bf16.msra.mxu0 %v2355_v15 }
 0x216   :  { %2076 = vmatprep.subr.bf16.mxu0 %v2356_v18 }
 0x218   :  { %2061 = vmatmul.mubr.bf16.gmra.mrb[28].mxu0 %v2615_v26  ;;  %v2360_v26 = vld [vmem:[%s3002_s7 + $0x10] sm:$0xff]  }
 0x219   :  { %2077 = vmatpush3.bf16.msra.mxu0 %v2356_v18  ;;  %2080 = vmatprep.mubr.bf16.mxu0 %v2644_v6 }
 0x21a   :  { %2078 = vmatprep.subr.bf16.mxu0 %v2357_v19 }
 0x21d   :  { %2079 = vmatpush3.bf16.msra.mxu0 %v2357_v19 }
 0x21e   :  { %2096 = vmatprep.subr.bf16.mxu0 %v2358_v22 }
 0x220   :  { %2081 = vmatmul.mubr.bf16.vlgmr.msra.gmra.mrb[32].mxu0 %v2642_v5 }
 0x221   :  { %2084 = vmatprep.mubr.bf16.mxu0 %v2652_v27  ;;  %2097 = vmatpush3.bf16.msra.mxu0 %v2358_v22 }
 0x222   :  { %2098 = vmatprep.subr.bf16.mxu0 %v2359_v23 }
 0x225   :  { %2099 = vmatpush3.bf16.msra.mxu0 %v2359_v23 }
 0x226   :  { %2100 = vmatprep.subr.bf16.mxu0 %v2360_v26 }
 0x228   :  { %2085 = vmatmul.mubr.bf16.gmra.mrb[36].mxu0 %v2649_v25 }
 0x229   :  { %2088 = vmatprep.mubr.bf16.mxu0 %v2660_v41  ;;  %2101 = vmatpush3.bf16.msra.mxu0 %v2360_v26 }
 0x22a   :  { %2102 = vmatprep.subr.bf16.mxu0 %v2361_v60 }
 0x22d   :  { %2103 = vmatpush3.bf16.msra.mxu0 %v2361_v60 }
 0x22e   :  { %2104 = vmatprep.subr.bf16.mxu0 %v2362_v61 }
 0x230   :  { %2089 = vmatmul.mubr.bf16.gmra.mrb[40].mxu0 %v2657_v40 }
 0x231   :  { %2092 = vmatprep.mubr.bf16.mxu0 %v653_v55  ;;  %2105 = vmatpush3.bf16.msra.mxu0 %v2362_v61 }
 0x232   :  { %2106 = vmatprep.subr.bf16.mxu0 %v2363_v62 }
 0x235   :  { %2107 = vmatpush3.bf16.msra.mxu0 %v2363_v62 }
 0x236   :  { %2108 = vmatprep.subr.bf16.mxu0 %v2364_v63 }
 0x238   :  { %2093 = vmatmul.mubr.bf16.gmra.mrb[44].mxu0 %v2665_v54 }
 0x239   :  { %2109 = vmatpush3.bf16.msra.mxu0 %v2364_v63 }
 0x23a   :  { %2110 = vmatprep.subr.bf16.mxu0 %v2365_v0 }
 0x23d   :  { %2111 = vmatpush3.bf16.msra.mxu0 %v2365_v0 }
 0x23e   :  { %2184 = vmatprep.subr.bf16.mxu0 %v2396_v32 }
 0x2d3   :  { %v2050_v1 = vpop.f32.mrb[16].mxu0 }
 0x2d4   :  { %v689_v2 = vpop.f32.mrb[17].mxu0 }
 0x2d5   :  { %v2051_v3 = vpop.f32.mrb[18].mxu0 }
 0x2d6   :  { %v753_v4 = vpack.c.bf16 %v2051_v3, %v2050_v1  ;;  %v692_v5 = vpop.f32.mrb[19].mxu0  ;;  %v2366_v3 = vld [vmem:[%s3004_s2] sm:$0xff]  }
 0x2d7   :  { %v752_v6 = vpack.c.bf16 %v692_v5, %v689_v2  ;;  %v2368_v5 = vld [vmem:[%s3004_s2 + $0x10] sm:$0xff]  }
 0x2d9   :  { %2112 = vmatprep.mubr.bf16.mxu0 %v752_v6  ;;  %v2369_v6 = vld [vmem:[%s3005_s3] sm:$0xff]  }
 0x2da   :  { %2113 = vmatmul.mubr.bf16.vlgmr.msra.gmra.mrb[32].mxu0 %v753_v4  ;;  %v2367_v4 = vld [vmem:[%s3004_s2 + $0x8] sm:$0xff]  }
 0x2db   :  { %v2054_v7 = vpop.f32.mrb[20].mxu0 }
 0x2dc   :  { %v705_v8 = vpop.f32.mrb[21].mxu0 }
 0x2dd   :  { %v2055_v9 = vpop.f32.mrb[22].mxu0 }
 0x2de   :  { %v755_v10 = vpack.c.bf16 %v2055_v9, %v2054_v7  ;;  %v708_v11 = vpop.f32.mrb[23].mxu0  ;;  %v2372_v7 = vld [vmem:[%s3006_s10] sm:$0xff]   ;;  %v2370_v9 = vld [vmem:[%s3005_s3 + $0x8] sm:$0xff]  }
 0x2df   :  { %v754_v12 = vpack.c.bf16 %v708_v11, %v705_v8  ;;  %v2373_v8 = vld [vmem:[%s3006_s10 + $0x8] sm:$0xff]   ;;  %v2375_v11 = vld [vmem:[%s3006_s10 + $0x18] sm:$0xff]  }
 0x2e1   :  { %2116 = vmatprep.mubr.bf16.mxu0 %v754_v12  ;;  %v2371_v12 = vld [vmem:[%s3005_s3 + $0x10] sm:$0xff]  }
 0x2e2   :  { %2117 = vmatmul.mubr.bf16.gmra.mrb[36].mxu0 %v755_v10  ;;  %v2374_v10 = vld [vmem:[%s3006_s10 + $0x10] sm:$0xff]  }
 0x2e3   :  { %v2058_v13 = vpop.f32.mrb[24].mxu0 }
 0x2e4   :  { %v721_v16 = vpop.f32.mrb[25].mxu0 }
 0x2e5   :  { %v2059_v17 = vpop.f32.mrb[26].mxu0 }
 0x2e6   :  { %v757_v20 = vpack.c.bf16 %v2059_v17, %v2058_v13  ;;  %v724_v21 = vpop.f32.mrb[27].mxu0  ;;  %v2376_v13 = vld [vmem:[%s3006_s10 + $0x20] sm:$0xff]   ;;  %v2378_v17 = vld [vmem:[%s3006_s10 + $0x30] sm:$0xff]  }
 0x2e7   :  { %v756_v24 = vpack.c.bf16 %v724_v21, %v721_v16  ;;  %v2377_v16 = vld [vmem:[%s3006_s10 + $0x28] sm:$0xff]   ;;  %v2380_v21 = vld [vmem:[%s3009_s11] sm:$0xff]  }
 0x2e8   :  { %2185 = vmatpush3.bf16.msra.mxu0 %v2380_v21 }
 0x2e9   :  { %2120 = vmatprep.mubr.bf16.mxu0 %v756_v24  ;;  %v2381_v24 = vld [vmem:[%s3009_s11 + $0x8] sm:$0xff]   ;;  %2186 = vmatprep.subr.bf16.mxu0 %v2396_v32 }
 0x2ea   :  { %2121 = vmatmul.mubr.bf16.gmra.mrb[40].mxu0 %v757_v20  ;;  %v2379_v20 = vld [vmem:[%s3006_s10 + $0x38] sm:$0xff]  }
 0x2eb   :  { %v2062_v25 = vpop.f32.mrb[28].mxu0 }
 0x2ec   :  { %v737_v27 = vpop.f32.mrb[29].mxu0  ;;  %2187 = vmatpush3.bf16.msra.mxu0 %v2381_v24 }
 0x2ed   :  { %v2063_v28 = vpop.f32.mrb[30].mxu0  ;;  %2188 = vmatprep.subr.bf16.mxu0 %v2396_v32 }
 0x2ee   :  { %v759_v29 = vpack.c.bf16 %v2063_v28, %v2062_v25  ;;  %v740_v30 = vpop.f32.mrb[31].mxu0  ;;  %v2382_v25 = vld [vmem:[%s3009_s11 + $0x10] sm:$0xff]   ;;  %v2384_v28 = vld [vmem:[%s3009_s11 + $0x20] sm:$0xff]  }
 0x2ef   :  { %v758_v31 = vpack.c.bf16 %v740_v30, %v737_v27  ;;  %v2383_v27 = vld [vmem:[%s3009_s11 + $0x18] sm:$0xff]   ;;  %v2386_v30 = vld [vmem:[%s3009_s11 + $0x30] sm:$0xff]  }
 0x2f0   :  { %2189 = vmatpush3.bf16.msra.mxu0 %v2382_v25 }
 0x2f1   :  { %2124 = vmatprep.mubr.bf16.mxu0 %v758_v31  ;;  %2190 = vmatprep.subr.bf16.mxu0 %v2396_v32  ;;  %v2387_v31 = vld [vmem:[%s3009_s11 + $0x38] sm:$0xff]  }
 0x2f2   :  { %2125 = vmatmul.mubr.bf16.gmra.mrb[44].mxu0 %v759_v29  ;;  %v2385_v29 = vld [vmem:[%s3009_s11 + $0x28] sm:$0xff]  }
 0x2f3   :  { %2200 = vmatprep.mubr.msk.bf16.mxu0 %vm2397_vm0, %v2396_v32 }
 0x2f4   :  { %2191 = vmatpush3.bf16.msra.mxu0 %v2383_v27 }
 0x2f5   :  { %2192 = vmatprep.subr.bf16.mxu0 %v2396_v32 }
 0x2f8   :  { %2193 = vmatpush3.bf16.msra.mxu0 %v2384_v28 }
 0x2f9   :  { %2194 = vmatprep.subr.bf16.mxu0 %v2396_v32 }
 0x2fc   :  { %2195 = vmatpush3.bf16.msra.mxu0 %v2385_v29 }
 0x2fd   :  { %2196 = vmatprep.subr.bf16.mxu0 %v2396_v32 }
 0x300   :  { %2197 = vmatpush3.bf16.msra.mxu0 %v2386_v30 }
 0x301   :  { %2198 = vmatprep.subr.bf16.mxu0 %v2396_v32 }
 0x304   :  { %2199 = vmatpush3.bf16.msra.mxu0 %v2387_v31 }
 0x305   :  { %2240 = vmatprep.subr.bf16.mxu0 %v2396_v32 }
 0x3ad   :  { %v2114_v34 = vpop.f32.mrb[32].mxu0 }
 0x3ae   :  { %v1091_v35 = vadd.f32 %v2114_v34, %v2741_v33  ;;  %v1019_v36 = vpop.f32.mrb[33].mxu0 }
 0x3af   :  { %v1089_v37 = vadd.f32 %v2741_v33, %v1019_v36  ;;  %v2115_v38 = vpop.f32.mrb[34].mxu0 }
 0x3b0   :  { %1107 = vst [vmem:[%s3008_s15 + $0x10] sm:$0xff] %v1091_v35  ;;  %v1092_v39 = vadd.f32 %v2115_v38, %v2741_v33  ;;  %v1022_v40 = vpop.f32.mrb[35].mxu0 }
 0x3b1   :  { %1105 = vst [vmem:[%s3008_s15] sm:$0xff] %v1089_v37  ;;  %v1090_v41 = vadd.f32 %v2741_v33, %v1022_v40 }
 0x3b2   :  { %1108 = vst [vmem:[%s3008_s15 + $0x18] sm:$0xff] %v1092_v39  ;;  %v2756_v42 = vpack.c.bf16 %v1092_v39, %v1091_v35 }
 0x3b3   :  { %1106 = vst [vmem:[%s3008_s15 + $0x8] sm:$0xff] %v1090_v41  ;;  %v1121_v43 = vpack.c.bf16 %v1090_v41, %v1089_v37 }
 0x3b5   :  { %v2118_v44 = vpop.f32.mrb[36].mxu0  ;;  %2129 = vmatpush3.bf16.msra.mxu1 %v1121_v43 }
 0x3b6   :  { %v1095_v45 = vadd.f32 %v2118_v44, %v2741_v33  ;;  %v1035_v46 = vpop.f32.mrb[37].mxu0  ;;  %2130 = vmatprep.subr.bf16.mxu1 %v2396_v32 }
 0x3b7   :  { %v1093_v47 = vadd.f32 %v2741_v33, %v1035_v46  ;;  %v2119_v48 = vpop.f32.mrb[38].mxu0 }
 0x3b8   :  { %1111 = vst [vmem:[%s3008_s15 + $0x30] sm:$0xff] %v1095_v45  ;;  %v1096_v49 = vadd.f32 %v2119_v48, %v2741_v33  ;;  %v1038_v50 = vpop.f32.mrb[39].mxu0 }
 0x3b9   :  { %1109 = vst [vmem:[%s3008_s15 + $0x20] sm:$0xff] %v1093_v47  ;;  %v1094_v51 = vadd.f32 %v2741_v33, %v1038_v50  ;;  %2131 = vmatpush3.bf16.msra.mxu1 %v2756_v42 }
 0x3ba   :  { %1112 = vst [vmem:[%s3008_s15 + $0x38] sm:$0xff] %v1096_v49  ;;  %v1124_v52 = vpack.c.bf16 %v1096_v49, %v1095_v45  ;;  %2132 = vmatprep.subr.bf16.mxu1 %v2396_v32 }
 0x3bb   :  { %1110 = vst [vmem:[%s3008_s15 + $0x28] sm:$0xff] %v1094_v51  ;;  %v1123_v53 = vpack.c.bf16 %v1094_v51, %v1093_v47 }
 0x3bd   :  { %v2122_v54 = vpop.f32.mrb[40].mxu0  ;;  %2133 = vmatpush3.bf16.msra.mxu1 %v1123_v53 }
 0x3be   :  { %v1099_v55 = vadd.f32 %v2122_v54, %v2741_v33  ;;  %v1051_v57 = vpop.f32.mrb[41].mxu0  ;;  %2134 = vmatprep.subr.bf16.mxu1 %v2396_v32 }
 0x3bf   :  { %v1097_v56 = vadd.f32 %v2741_v33, %v1051_v57  ;;  %v2123_v58 = vpop.f32.mrb[42].mxu0 }
 0x3c0   :  { %1115 = vst [vmem:[%s3008_s15 + $0x50] sm:$0xff] %v1099_v55  ;;  %v1100_v59 = vadd.f32 %v2123_v58, %v2741_v33  ;;  %v1054_v14 = vpop.f32.mrb[43].mxu0 }
 0x3c1   :  { %1113 = vst [vmem:[%s3008_s15 + $0x40] sm:$0xff] %v1097_v56  ;;  %v1098_v15 = vadd.f32 %v2741_v33, %v1054_v14  ;;  %2135 = vmatpush3.bf16.msra.mxu1 %v1124_v52 }
 0x3c2   :  { %1116 = vst [vmem:[%s3008_s15 + $0x58] sm:$0xff] %v1100_v59  ;;  %v1126_v18 = vpack.c.bf16 %v1100_v59, %v1099_v55  ;;  %2136 = vmatprep.subr.bf16.mxu1 %v2396_v32 }
 0x3c3   :  { %1114 = vst [vmem:[%s3008_s15 + $0x48] sm:$0xff] %v1098_v15  ;;  %v1125_v19 = vpack.c.bf16 %v1098_v15, %v1097_v56 }
 0x3c5   :  { %v2126_v22 = vpop.f32.mrb[44].mxu0  ;;  %2137 = vmatpush3.bf16.msra.mxu1 %v1125_v19 }
 0x3c6   :  { %v1103_v23 = vadd.f32 %v2126_v22, %v2741_v33  ;;  %v1067_v26 = vpop.f32.mrb[45].mxu0  ;;  %2138 = vmatprep.subr.bf16.mxu1 %v2396_v32  ;;  %v2389_v22 = vld [vmem:[%s3010_s13 + $0x8] sm:$0xff]  }
 0x3c7   :  { %v1101_v60 = vadd.f32 %v2741_v33, %v1067_v26  ;;  %v2127_v61 = vpop.f32.mrb[46].mxu0  ;;  %v2391_v26 = vld [vmem:[%s3010_s13 + $0x18] sm:$0xff]  }
 0x3c8   :  { %1119 = vst [vmem:[%s3008_s15 + $0x70] sm:$0xff] %v1103_v23  ;;  %v1104_v62 = vadd.f32 %v2127_v61, %v2741_v33  ;;  %v1070_v63 = vpop.f32.mrb[47].mxu0  ;;  %v2393_v61 = vld [vmem:[%s3010_s13 + $0x28] sm:$0xff]  }
 0x3c9   :  { %1117 = vst [vmem:[%s3008_s15 + $0x60] sm:$0xff] %v1101_v60  ;;  %v1102_v0 = vadd.f32 %v2741_v33, %v1070_v63  ;;  %2139 = vmatpush3.bf16.msra.mxu1 %v1126_v18  ;;  %v2395_v63 = vld [vmem:[%s3010_s13 + $0x38] sm:$0xff]  }
 0x3ca   :  { %1120 = vst [vmem:[%s3008_s15 + $0x78] sm:$0xff] %v1104_v62  ;;  %v1128_v1 = vpack.c.bf16 %v1104_v62, %v1103_v23  ;;  %2140 = vmatprep.subr.bf16.mxu1 %v2396_v32  ;;  %v2390_v23 = vld [vmem:[%s3010_s13 + $0x10] sm:$0xff]  }
 0x3cb   :  { %1118 = vst [vmem:[%s3008_s15 + $0x68] sm:$0xff] %v1102_v0  ;;  %v1127_v2 = vpack.c.bf16 %v1102_v0, %v1101_v60  ;;  %v2392_v60 = vld [vmem:[%s3010_s13 + $0x20] sm:$0xff]   ;;  %v2394_v62 = vld [vmem:[%s3010_s13 + $0x30] sm:$0xff]  }
 0x3cd   :  { %2141 = vmatpush3.bf16.msra.mxu1 %v1127_v2 }
 0x3ce   :  { %2142 = vmatprep.subr.bf16.mxu1 %v2396_v32 }
 0x3d1   :  { %2143 = vmatpush3.bf16.msra.mxu1 %v1128_v1 }
 0x3d2   :  { %2156 = vmatprep.subr.bf16.mxu1 %v2396_v32 }
 0x3d4   :  { %2145 = vmatmul.mubr.bf16.vlgmr.msra.gmra.mrb[16].mxu1 %v2366_v3 }
 0x3d5   :  { %2157 = vmatpush3.bf16.msra.mxu1 %v1121_v43  ;;  %2148 = vmatprep.mubr.msk.bf16.mxu1 %vm2397_vm0, %v2396_v32 }
 0x3d6   :  { %2158 = vmatprep.subr.bf16.mxu1 %v2396_v32 }
 0x3d9   :  { %2159 = vmatpush3.bf16.msra.mxu1 %v2756_v42 }
 0x3da   :  { %2160 = vmatprep.subr.bf16.mxu1 %v2396_v32 }
 0x3dc   :  { %2149 = vmatmul.mubr.bf16.gmra.mrb[20].mxu1 %v2367_v4 }
 0x3dd   :  { %2161 = vmatpush3.bf16.msra.mxu1 %v1123_v53  ;;  %2152 = vmatprep.mubr.msk.bf16.mxu1 %vm2397_vm0, %v2396_v32 }
 0x3de   :  { %2162 = vmatprep.subr.bf16.mxu1 %v2396_v32 }
 0x3e1   :  { %2163 = vmatpush3.bf16.msra.mxu1 %v1124_v52 }
 0x3e2   :  { %2164 = vmatprep.subr.bf16.mxu1 %v2396_v32 }
 0x3e4   :  { %2153 = vmatmul.mubr.bf16.gmra.mrb[24].mxu1 %v2368_v5 }
 0x3e5   :  { %2165 = vmatpush3.bf16.msra.mxu1 %v1125_v19  ;;  %2172 = vmatprep.mubr.msk.bf16.mxu1 %vm2397_vm0, %v2396_v32  ;;  %v2388_v19 = vld [vmem:[%s3010_s13] sm:$0xff]  }
 0x3e6   :  { %2166 = vmatprep.subr.bf16.mxu1 %v2396_v32 }
 0x3e9   :  { %2167 = vmatpush3.bf16.msra.mxu1 %v1126_v18 }
 0x3ea   :  { %2168 = vmatprep.subr.bf16.mxu1 %v2396_v32 }
 0x3ed   :  { %2169 = vmatpush3.bf16.msra.mxu1 %v1127_v2 }
 0x3ee   :  { %2170 = vmatprep.subr.bf16.mxu1 %v2396_v32 }
 0x3f1   :  { %2171 = vmatpush3.bf16.msra.mxu1 %v1128_v1 }
 0x3f2   :  { %2212 = vmatprep.subr.bf16.mxu1 %v2396_v32 }
 0x3f4   :  { %2173 = vmatmul.mubr.bf16.vlgmr.msra.gmra.mrb[28].mxu1 %v2369_v6 }
 0x3f5   :  { %2176 = vmatprep.mubr.msk.bf16.mxu1 %vm2397_vm0, %v2396_v32  ;;  %2213 = vmatpush3.bf16.msra.mxu1 %v2372_v7 }
 0x3f6   :  { %2214 = vmatprep.subr.bf16.mxu1 %v2396_v32 }
 0x3f9   :  { %2215 = vmatpush3.bf16.msra.mxu1 %v2373_v8 }
 0x3fa   :  { %2216 = vmatprep.subr.bf16.mxu1 %v2396_v32 }
 0x3fc   :  { %2177 = vmatmul.mubr.bf16.gmra.mrb[32].mxu1 %v2370_v9 }
 0x3fd   :  { %2180 = vmatprep.mubr.msk.bf16.mxu1 %vm2397_vm0, %v2396_v32  ;;  %2217 = vmatpush3.bf16.msra.mxu1 %v2374_v10 }
 0x3fe   :  { %2218 = vmatprep.subr.bf16.mxu1 %v2396_v32 }
 0x401   :  { %2219 = vmatpush3.bf16.msra.mxu1 %v2375_v11 }
 0x402   :  { %2220 = vmatprep.subr.bf16.mxu1 %v2396_v32 }
 0x404   :  { %2181 = vmatmul.mubr.bf16.gmra.mrb[36].mxu1 %v2371_v12 }
 0x405   :  { %2221 = vmatpush3.bf16.msra.mxu1 %v2376_v13  ;;  %2228 = vmatprep.mubr.msk.bf16.mxu1 %vm2397_vm0, %v2396_v32  ;;  %v1775_v13 = vld [vmem:[%s3011_s12] ss:$0 sm:$0xff] }
 0x406   :  { %2222 = vmatprep.subr.bf16.mxu1 %v2396_v32 }
 0x409   :  { %2223 = vmatpush3.bf16.msra.mxu1 %v2377_v16 }
 0x40a   :  { %2224 = vmatprep.subr.bf16.mxu1 %v2396_v32 }
 0x40d   :  { %2225 = vmatpush3.bf16.msra.mxu1 %v2378_v17 }
 0x40e   :  { %2226 = vmatprep.subr.bf16.mxu1 %v2396_v32 }
 0x411   :  { %2227 = vmatpush3.bf16.msra.mxu1 %v2379_v20 }
 0x412   :  { %2268 = vmatprep.subr.bf16.mxu1 %v2396_v32 }
 0x4a7   :  { %v1187_v33 = vpop.f32.mrb[16].mxu1 }
 0x4a8   :  { %v2146_v34 = vpop.f32.mrb[17].mxu1 }
 0x4a9   :  { %v1190_v35 = vpop.f32.mrb[18].mxu1 }
 0x4aa   :  { %v1210_v36 = vpack.c.bf16 %v1190_v35, %v1187_v33  ;;  %v2147_v37 = vpop.f32.mrb[19].mxu1 }
 0x4ac   :  { %2229 = vmatmul.mubr.bf16.vlgmr.msra.gmra.mrb[40].mxu1 %v1210_v36 }
 0x4ad   :  { %2232 = vmatprep.mubr.msk.bf16.mxu1 %vm2397_vm0, %v2396_v32  ;;  %2276 = vmatpush3.bf16.msra.mxu1 %v2388_v19 }
 0x4ae   :  { %2269 = vmatprep.subr.bf16.mxu1 %v2396_v32 }
 0x4af   :  { %v1195_v38 = vpop.f32.mrb[20].mxu1 }
 0x4b0   :  { %v2150_v39 = vpop.f32.mrb[21].mxu1 }
 0x4b1   :  { %v1198_v40 = vpop.f32.mrb[22].mxu1  ;;  %2277 = vmatpush3.bf16.msra.mxu1 %v2389_v22 }
 0x4b2   :  { %v1211_v41 = vpack.c.bf16 %v1198_v40, %v1195_v38  ;;  %v2151_v42 = vpop.f32.mrb[23].mxu1  ;;  %2270 = vmatprep.subr.bf16.mxu1 %v2396_v32 }
 0x4b4   :  { %2233 = vmatmul.mubr.bf16.gmra.mrb[44].mxu1 %v1211_v41 }
 0x4b5   :  { %2236 = vmatprep.mubr.msk.bf16.mxu1 %vm2397_vm0, %v2396_v32  ;;  %2278 = vmatpush3.bf16.msra.mxu1 %v2390_v23 }
 0x4b6   :  { %2271 = vmatprep.subr.bf16.mxu1 %v2396_v32 }
 0x4b7   :  { %v1203_v43 = vpop.f32.mrb[24].mxu1 }
 0x4b8   :  { %v2154_v44 = vpop.f32.mrb[25].mxu1 }
 0x4b9   :  { %v1206_v45 = vpop.f32.mrb[26].mxu1  ;;  %2279 = vmatpush3.bf16.msra.mxu1 %v2391_v26 }
 0x4ba   :  { %v1212_v46 = vpack.c.bf16 %v1206_v45, %v1203_v43  ;;  %v2155_v47 = vpop.f32.mrb[27].mxu1  ;;  %2272 = vmatprep.subr.bf16.mxu1 %v2396_v32 }
 0x4bc   :  { %2237 = vmatmul.mubr.bf16.gmra.mrb[48].mxu1 %v1212_v46 }
 0x4bd   :  { %2260 = vmatprep.mubr.msk.bf16.mxu1 %vm2397_vm0, %v2396_v32  ;;  %2280 = vmatpush3.bf16.msra.mxu1 %v2392_v60 }
 0x4be   :  { %2273 = vmatprep.subr.bf16.mxu1 %v2396_v32 }
 0x4c1   :  { %2281 = vmatpush3.bf16.msra.mxu1 %v2393_v61 }
 0x4c2   :  { %2274 = vmatprep.subr.bf16.mxu1 %v2396_v32 }
 0x4c5   :  { %2282 = vmatpush3.bf16.msra.mxu1 %v2394_v62 }
 0x4c6   :  { %2275 = vmatprep.subr.bf16.mxu1 %v2396_v32 }
 0x4c7   :  { %v1271_v48 = vpop.f32.mrb[28].mxu1 }
 0x4c8   :  { %v2174_v49 = vpop.f32.mrb[29].mxu1 }
 0x4c9   :  { %v1274_v50 = vpop.f32.mrb[30].mxu1  ;;  %2283 = vmatpush3.bf16.msra.mxu1 %v2395_v63 }
 0x4ca   :  { %v1294_v51 = vpack.c.bf16 %v1274_v50, %v1271_v48  ;;  %v2175_v52 = vpop.f32.mrb[31].mxu1 }
 0x4cc   :  { %2201 = vmatmul.mubr.bf16.vlgmr.msra.gmra.mrb[48].mxu0 %v1294_v51 }
 0x4cd   :  { %2204 = vmatprep.mubr.msk.bf16.mxu0 %vm2397_vm0, %v2396_v32  ;;  %2241 = vmatpush3.bf16.msra.mxu0 %v2388_v19 }
 0x4ce   :  { %2242 = vmatprep.subr.bf16.mxu0 %v2396_v32 }
 0x4cf   :  { %v1279_v53 = vpop.f32.mrb[32].mxu1 }
 0x4d0   :  { %v2178_v54 = vpop.f32.mrb[33].mxu1 }
 0x4d1   :  { %v1282_v55 = vpop.f32.mrb[34].mxu1  ;;  %2243 = vmatpush3.bf16.msra.mxu0 %v2389_v22  ;;  %v1776_v54 = vld [vmem:[%s3012_s14] ss:$0 sm:$0xff] }
 0x4d2   :  { %v1295_v57 = vpack.c.bf16 %v1282_v55, %v1279_v53  ;;  %v2179_v56 = vpop.f32.mrb[35].mxu1  ;;  %2244 = vmatprep.subr.bf16.mxu0 %v2396_v32 }
 0x4d4   :  { %2205 = vmatmul.mubr.bf16.gmra.mrb[52].mxu0 %v1295_v57 }
 0x4d5   :  { %2208 = vmatprep.mubr.msk.bf16.mxu0 %vm2397_vm0, %v2396_v32  ;;  %2245 = vmatpush3.bf16.msra.mxu0 %v2390_v23 }
 0x4d6   :  { %2246 = vmatprep.subr.bf16.mxu0 %v2396_v32 }
 0x4d7   :  { %v1287_v58 = vpop.f32.mrb[36].mxu1 }
 0x4d8   :  { %v2182_v59 = vpop.f32.mrb[37].mxu1 }
 0x4d9   :  { %v1290_v14 = vpop.f32.mrb[38].mxu1  ;;  %2247 = vmatpush3.bf16.msra.mxu0 %v2391_v26 }
 0x4da   :  { %v1296_v15 = vpack.c.bf16 %v1290_v14, %v1287_v58  ;;  %v2183_v18 = vpop.f32.mrb[39].mxu1  ;;  %2248 = vmatprep.subr.bf16.mxu0 %v2396_v32 }
 0x4dc   :  { %2209 = vmatmul.mubr.bf16.gmra.mrb[56].mxu0 %v1296_v15 }
 0x4dd   :  { %2256 = vmatprep.mubr.msk.bf16.mxu0 %vm2397_vm0, %v2396_v32  ;;  %2249 = vmatpush3.bf16.msra.mxu0 %v2392_v60 }
 0x4de   :  { %2250 = vmatprep.subr.bf16.mxu0 %v2396_v32 }
 0x4e1   :  { %2251 = vmatpush3.bf16.msra.mxu0 %v2393_v61 }
 0x4e2   :  { %2252 = vmatprep.subr.bf16.mxu0 %v2396_v32 }
 0x4e5   :  { %2253 = vmatpush3.bf16.msra.mxu0 %v2394_v62 }
 0x4e6   :  { %2254 = vmatprep.subr.bf16.mxu0 %v2396_v32 }
 0x4e9   :  { %2255 = vmatpush3.bf16.msra.mxu0 %v2395_v63 }
 0x57f   :  { %v1516_v0 = vpop.f32.mrb[40].mxu1 }
 0x580   :  { %v2230_v1 = vpop.f32.mrb[41].mxu1 }
 0x581   :  { %v1519_v2 = vpop.f32.mrb[42].mxu1 }
 0x582   :  { %v2231_v3 = vpop.f32.mrb[43].mxu1 }
 0x587   :  { %v1524_v4 = vpop.f32.mrb[44].mxu1 }
 0x588   :  { %v2234_v5 = vpop.f32.mrb[45].mxu1 }
 0x589   :  { %v1527_v6 = vpop.f32.mrb[46].mxu1 }
 0x58a   :  { %v2235_v7 = vpop.f32.mrb[47].mxu1 }
 0x58f   :  { %v1532_v8 = vpop.f32.mrb[48].mxu1 }
 0x590   :  { %v2238_v9 = vpop.f32.mrb[49].mxu1 }
 0x591   :  { %v1535_v10 = vpop.f32.mrb[50].mxu1 }
 0x592   :  { %v2239_v11 = vpop.f32.mrb[51].mxu1 }
 0x59f   :  { %v1411_v12 = vpop.f32.mrb[48].mxu0 }
 0x5a0   :  { %v1517_v16 = vadd.f32 %v1516_v0, %v1411_v12  ;;  %v2202_v17 = vpop.f32.mrb[49].mxu0 }
 0x5a1   :  { %v1414_v20 = vpop.f32.mrb[50].mxu0 }
 0x5a2   :  { %v1546_v21 = vadd.f32 %v1775_v13, %v1517_v16  ;;  %v1520_v24 = vadd.f32 %v1519_v2, %v1414_v20  ;;  %v2203_v25 = vpop.f32.mrb[51].mxu0 }
 0x5a4   :  { %v1547_v27 = vadd.f32 %v1775_v13, %v1520_v24  ;;  %v1552_v28 = vmax.f32 %v1546_v21, 0.0 }
 0x5a6   :  { %v1553_v29 = vmax.f32 %v1547_v27, 0.0 }
 0x5a7   :  { %v1419_v30 = vpop.f32.mrb[52].mxu0 }
 0x5a8   :  { %v1558_v31 = vpack.c.bf16 %v1553_v29, %v1552_v28  ;;  %v1525_v33 = vadd.f32 %v1524_v4, %v1419_v30  ;;  %v2206_v34 = vpop.f32.mrb[53].mxu0 }
 0x5a9   :  { %v1422_v35 = vpop.f32.mrb[54].mxu0 }
 0x5aa   :  { %v1548_v36 = vadd.f32 %v1775_v13, %v1525_v33  ;;  %v1528_v37 = vadd.f32 %v1527_v6, %v1422_v35  ;;  %v2207_v38 = vpop.f32.mrb[55].mxu0  ;;  %2257 = vmatmul.mubr.bf16.vlgmr.msra.gmra.mrb[60].mxu0 %v1558_v31 }
 0x5ac   :  { %v1549_v39 = vadd.f32 %v1775_v13, %v1528_v37  ;;  %v1554_v40 = vmax.f32 %v1548_v36, 0.0 }
 0x5ae   :  { %v1555_v41 = vmax.f32 %v1549_v39, 0.0 }
 0x5af   :  { %v1427_v42 = vpop.f32.mrb[56].mxu0 }
 0x5b0   :  { %v1559_v43 = vpack.c.bf16 %v1555_v41, %v1554_v40  ;;  %v1533_v44 = vadd.f32 %v1532_v8, %v1427_v42  ;;  %v2210_v45 = vpop.f32.mrb[57].mxu0 }
 0x5b1   :  { %v1430_v46 = vpop.f32.mrb[58].mxu0 }
 0x5b2   :  { %v1550_v47 = vadd.f32 %v1775_v13, %v1533_v44  ;;  %v1536_v48 = vadd.f32 %v1535_v10, %v1430_v46  ;;  %v2211_v49 = vpop.f32.mrb[59].mxu0  ;;  %2261 = vmatmul.mubr.bf16.vlgmr.msra.gmra.mrb[52].mxu1 %v1559_v43 }
 0x5b3   :  { %2264 = vmatprep.mubr.msk.bf16.mxu1 %vm2397_vm0, %v2396_v32 }
 0x5b4   :  { %v1551_v50 = vadd.f32 %v1775_v13, %v1536_v48  ;;  %v1556_v51 = vmax.f32 %v1550_v47, 0.0 }
 0x5b6   :  { %v1557_v52 = vmax.f32 %v1551_v50, 0.0 }
 0x5b8   :  { %v1560_v53 = vpack.c.bf16 %v1557_v52, %v1556_v51 }
 0x5ba   :  { %2265 = vmatmul.mubr.bf16.gmra.mrb[56].mxu1 %v1560_v53 }
 0x67d   :  { %v1666_v55 = vpop.f32.mrb[60].mxu0 }
 0x67e   :  { %v1667_v57 = vadd.f32 %v1776_v54, %v1666_v55  ;;  %v2258_v56 = vpop.f32.mrb[61].mxu0 }
 0x67f   :  { %v1669_v58 = vpop.f32.mrb[62].mxu0 }
 0x680   :  { %1689 = vst [vmem:[%s3013_s16] sm:$0xff] %v1667_v57  ;;  %v1670_v59 = vadd.f32 %v1776_v54, %v1669_v58  ;;  %v2259_v14 = vpop.f32.mrb[63].mxu0 }
 0x682   :  { %1690 = vst [vmem:[%s3013_s16 + $0x8] sm:$0xff] %v1670_v59 }
 0x685   :  { %v1674_v32 = vpop.f32.mrb[52].mxu1 }
 0x686   :  { %v1675_v15 = vadd.f32 %v1776_v54, %v1674_v32  ;;  %v2262_v18 = vpop.f32.mrb[53].mxu1 }
 0x687   :  { %v1677_v19 = vpop.f32.mrb[54].mxu1 }
 0x688   :  { %1691 = vst [vmem:[%s3013_s16 + $0x10] sm:$0xff] %v1675_v15  ;;  %v1678_v22 = vadd.f32 %v1776_v54, %v1677_v19  ;;  %v2263_v23 = vpop.f32.mrb[55].mxu1 }
 0x68a   :  { %1692 = vst [vmem:[%s3013_s16 + $0x18] sm:$0xff] %v1678_v22 }
 0x68d   :  { %v1682_v26 = vpop.f32.mrb[56].mxu1 }
 0x68e   :  { %v1683_v60 = vadd.f32 %v1776_v54, %v1682_v26  ;;  %v2266_v61 = vpop.f32.mrb[57].mxu1 }
 0x68f   :  { %v1685_v62 = vpop.f32.mrb[58].mxu1 }
 0x690   :  { %1693 = vst [vmem:[%s3013_s16 + $0x20] sm:$0xff] %v1683_v60  ;;  %v1686_v63 = vadd.f32 %v1776_v54, %v1685_v62  ;;  %v2267_v0 = vpop.f32.mrb[59].mxu1 }
 0x692   :  { %1694 = vst [vmem:[%s3013_s16 + $0x28] sm:$0xff] %v1686_v63 }

</bundles_post_ra>
